<compile_context>
chip_gen: v6e
topology: v6e:2x2x1
jax: 0.10.0
libtpu: 0.0.40
codegen_flags: <defaults>
</compile_context>

<pallas_src>
import functools

import jax
import jax.numpy as jnp
from jax import lax
from jax.experimental import pallas as pl
from jax.experimental.pallas import tpu as pltpu


def _lstm_fc_kernel(x_ref, w_ih_ref, w_hh_ref, b_ref, w_fc_ref, b_fc_ref,
                    out_ref, hn_ref, cn_ref):
    """Full LSTM unroll over T + final Linear, single invocation.

    Refs (all VMEM, full-array blocks). Gate column order is (i, f, o, g).
      x_ref    : (T*B, I)  float32   time-major, flattened over (T, B)
      w_ih_ref : (I, 4H)   float32
      w_hh_ref : (H, 4H)   float32
      b_ref    : (1, 4H)   float32   combined LSTM bias (bias_ih + bias_hh)
      w_fc_ref : (H, O)    float32   (== fc.weight.T)
      b_fc_ref : (1, O)    float32
      out_ref  : (B, O)    float32
      hn_ref   : (B, H)    float32
      cn_ref   : (B, H)    float32
    """
    B, H = hn_ref.shape
    T = x_ref.shape[0] // B
    H3 = 3 * H

    w_hh = w_hh_ref[...]

    # Hoisted input projection + bias: one big MXU matmul, off the serial path.
    xw = (jnp.dot(x_ref[...], w_ih_ref[...],
                  preferred_element_type=jnp.float32)
          + b_ref[...])                                   # (T*B, 4H)

    h = jnp.zeros((B, H), jnp.float32)
    c = jnp.zeros((B, H), jnp.float32)

    # T is small and static: full Python unroll (static slice indices, no loop
    # overhead, LLO scheduler sees the whole recurrence).
    for t in range(T):
        gates = xw[t * B:(t + 1) * B, :] + jnp.dot(
            h, w_hh, preferred_element_type=jnp.float32)  # (B, 4H)
        sig = jax.nn.sigmoid(gates[:, :H3])               # i, f, o in one slab
        g_g = jnp.tanh(gates[:, H3:])                     # g
        i_g = sig[:, :H]
        f_g = sig[:, H:2 * H]
        o_g = sig[:, 2 * H:H3]
        c = f_g * c + i_g * g_g
        h = o_g * jnp.tanh(c)

    out_ref[...] = (jnp.dot(h, w_fc_ref[...],
                            preferred_element_type=jnp.float32)
                    + b_fc_ref[...])
    hn_ref[...] = h
    cn_ref[...] = c


def prepare_params(weight_ih, weight_hh, bias_ih, bias_hh, fc_weight, fc_bias):
    """Convert PyTorch-layout LSTM/Linear params to the kernel layout.

    PyTorch: weight_ih_l0 (4H, I), weight_hh_l0 (4H, H), biases (4H,), gate row
    order (i, f, g, o); fc.weight (O, H), fc.bias (O,).
    Kernel:  transposed weights with gate column order (i, f, o, g), combined
    bias, fc.weight.T.
    """
    H = weight_hh.shape[1]
    perm = jnp.concatenate([
        jnp.arange(0, 2 * H),        # i, f
        jnp.arange(3 * H, 4 * H),    # o
        jnp.arange(2 * H, 3 * H),    # g
    ])
    w_ih_t = weight_ih[perm].T                       # (I, 4H)
    w_hh_t = weight_hh[perm].T                       # (H, 4H)
    b = (bias_ih + bias_hh)[perm][None, :]           # (1, 4H)
    w_fc_t = fc_weight.T                             # (H, O)
    b_fc = fc_bias[None, :]                          # (1, O)
    return w_ih_t, w_hh_t, b, w_fc_t, b_fc


@functools.partial(jax.jit, static_argnames=())
def lstm_model_forward(x, w_ih_t, w_hh_t, b, w_fc_t, b_fc):
    """Forward pass matching LSTMModel.forward(x, hidden=None).

    Args:
      x      : (B, T, I) float32, batch_first like PyTorch.
      w_ih_t, w_hh_t, b, w_fc_t, b_fc : kernel-layout params (see prepare_params).

    Returns:
      (out, (h_n, c_n)) with out: (B, O), h_n/c_n: (num_layers=1, B, H).
    """
    B, T, I = x.shape
    H = w_hh_t.shape[0]
    O = w_fc_t.shape[1]

    # Pad batch to a sublane multiple (>= 8) so every vreg row is dense.
    Bp = max(8, ((B + 7) // 8) * 8)
    x_tm = jnp.transpose(x, (1, 0, 2)).astype(jnp.float32)   # (T, B, I)
    if Bp != B:
        x_tm = jnp.pad(x_tm, ((0, 0), (0, Bp - B), (0, 0)))
    x_2d = x_tm.reshape(T * Bp, I)                            # time-major, flat

    vmem = pl.BlockSpec(memory_space=pltpu.MemorySpace.VMEM)

    out, h_n, c_n = pl.pallas_call(
        _lstm_fc_kernel,
        out_shape=(
            jax.ShapeDtypeStruct((Bp, O), jnp.float32),
            jax.ShapeDtypeStruct((Bp, H), jnp.float32),
            jax.ShapeDtypeStruct((Bp, H), jnp.float32),
        ),
        in_specs=[vmem] * 6,
        out_specs=(vmem, vmem, vmem),
    )(x_2d, w_ih_t, w_hh_t, b, w_fc_t, b_fc)

    out = out[:B]
    h_n = h_n[:B]
    c_n = c_n[:B]
    # num_layers = 1 leading axis, like torch.nn.LSTM's (h_n, c_n)
    return out, (h_n[None, :, :], c_n[None, :, :])


def _reference_forward(x, weight_ih, weight_hh, bias_ih, bias_hh,
                       fc_weight, fc_bias):
    """Pure-JAX reference in PyTorch layout / gate order (i, f, g, o)."""
    B, T, _ = x.shape
    H = weight_hh.shape[1]
    w_ih_t = weight_ih.T
    w_hh_t = weight_hh.T
    b = (bias_ih + bias_hh)[None, :]

    def step(carry, x_t):
        h, c = carry
        gates = x_t @ w_ih_t + h @ w_hh_t + b
        i_g = jax.nn.sigmoid(gates[:, 0 * H:1 * H])
        f_g = jax.nn.sigmoid(gates[:, 1 * H:2 * H])
        g_g = jnp.tanh(gates[:, 2 * H:3 * H])
        o_g = jax.nn.sigmoid(gates[:, 3 * H:4 * H])
        c = f_g * c + i_g * g_g
        h = o_g * jnp.tanh(c)
        return (h, c), None

    init = (jnp.zeros((B, H), jnp.float32), jnp.zeros((B, H), jnp.float32))
    (h, c), _ = lax.scan(step, init, jnp.transpose(x, (1, 0, 2)))
    out = h @ fc_weight.T + fc_bias[None, :]
    return out, h, c


if __name__ == "__main__":
    # Module hyperparameters (from LSTMModel.__init__ defaults).
    INPUT_SIZE = 6
    HIDDEN_SIZE = 64
    OUTPUT_SIZE = 2
    NUM_LAYERS = 1

    B, T = 2, 8

    key = jax.random.PRNGKey(0)
    kx, k1, k2, k3, k4, k5, k6 = jax.random.split(key, 7)

    # PyTorch-layout synthetic parameters (uniform(-1/sqrt(H), 1/sqrt(H))).
    bound = 1.0 / (HIDDEN_SIZE ** 0.5)
    weight_ih = jax.random.uniform(k1, (4 * HIDDEN_SIZE, INPUT_SIZE),
                                   jnp.float32, -bound, bound)
    weight_hh = jax.random.uniform(k2, (4 * HIDDEN_SIZE, HIDDEN_SIZE),
                                   jnp.float32, -bound, bound)
    bias_ih = jax.random.uniform(k3, (4 * HIDDEN_SIZE,), jnp.float32,
                                 -bound, bound)
    bias_hh = jax.random.uniform(k4, (4 * HIDDEN_SIZE,), jnp.float32,
                                 -bound, bound)
    fc_weight = jax.random.uniform(k5, (OUTPUT_SIZE, HIDDEN_SIZE), jnp.float32,
                                   -bound, bound)
    fc_bias = jax.random.uniform(k6, (OUTPUT_SIZE,), jnp.float32, -bound, bound)

    kernel_params = prepare_params(weight_ih, weight_hh, bias_ih, bias_hh,
                                   fc_weight, fc_bias)

    # Example input, batch_first like PyTorch: (B, T, input_size)
    x = jax.random.normal(kx, (B, T, INPUT_SIZE), jnp.float32)

    out, (h_n, c_n) = lstm_model_forward(x, *kernel_params)
    jax.block_until_ready((out, h_n, c_n))

    # Sanity-check against a pure-JAX reference (PyTorch gate order).
    ref_out, ref_h, ref_c = _reference_forward(x, weight_ih, weight_hh,
                                               bias_ih, bias_hh,
                                               fc_weight, fc_bias)
    assert out.shape == (B, OUTPUT_SIZE)
    assert h_n.shape == (NUM_LAYERS, B, HIDDEN_SIZE)
    assert c_n.shape == (NUM_LAYERS, B, HIDDEN_SIZE)
    assert jnp.allclose(out, ref_out, atol=1e-5, rtol=1e-5)
    assert jnp.allclose(h_n[0], ref_h, atol=1e-5, rtol=1e-5)
    assert jnp.allclose(c_n[0], ref_c, atol=1e-5, rtol=1e-5)

    print("KERNEL_OK")
</pallas_src>

<mosaic_0001>
module attributes {stable_mosaic.version = 11 : i64} {
  func.func @_lstm_fc_kernel(%arg0: memref<64x6xf32, #tpu.memory_space<vmem>>, %arg1: memref<6x256xf32, #tpu.memory_space<vmem>>, %arg2: memref<64x256xf32, #tpu.memory_space<vmem>>, %arg3: memref<1x256xf32, #tpu.memory_space<vmem>>, %arg4: memref<64x2xf32, #tpu.memory_space<vmem>>, %arg5: memref<1x2xf32, #tpu.memory_space<vmem>>, %arg6: memref<8x2xf32, #tpu.memory_space<vmem>>, %arg7: memref<8x64xf32, #tpu.memory_space<vmem>>, %arg8: memref<8x64xf32, #tpu.memory_space<vmem>>) attributes {dimension_semantics = [], scalar_prefetch = 0 : i64, scratch_operands = 0 : i64, tpu.core_type = #tpu.core_type<tc>} {
    %c0 = arith.constant 0 : index
    %c0_0 = arith.constant 0 : index
    %0 = vector.load %arg2[%c0, %c0_0] : memref<64x256xf32, #tpu.memory_space<vmem>>, vector<64x256xf32>
    %c0_1 = arith.constant 0 : index
    %c0_2 = arith.constant 0 : index
    %1 = vector.load %arg0[%c0_1, %c0_2] : memref<64x6xf32, #tpu.memory_space<vmem>>, vector<64x6xf32>
    %c0_3 = arith.constant 0 : index
    %c0_4 = arith.constant 0 : index
    %2 = vector.load %arg1[%c0_3, %c0_4] : memref<6x256xf32, #tpu.memory_space<vmem>>, vector<6x256xf32>
    %cst = arith.constant dense<0.000000e+00> : vector<64x256xf32>
    %3 = tpu.matmul %1, %2, %cst {dimension_numbers = #tpu.dot_dimension_numbers<[1], [0], [0], [1], [0, 0, 1, 1], [], []>} : vector<64x6xf32>, vector<6x256xf32>, vector<64x256xf32> -> vector<64x256xf32>
    %c0_5 = arith.constant 0 : index
    %c0_6 = arith.constant 0 : index
    %4 = vector.load %arg3[%c0_5, %c0_6] : memref<1x256xf32, #tpu.memory_space<vmem>>, vector<1x256xf32>
    %5 = vector.broadcast %4 : vector<1x256xf32> to vector<64x256xf32>
    %6 = arith.addf %3, %5 : vector<64x256xf32>
    %cst_7 = arith.constant 0.000000e+00 : f32
    %7 = vector.broadcast %cst_7 : f32 to vector<8x64xf32>
    %cst_8 = arith.constant 0.000000e+00 : f32
    %8 = vector.broadcast %cst_8 : f32 to vector<8x64xf32>
    %9 = vector.extract_strided_slice %6 {offsets = [0, 0], sizes = [8, 256], strides = [1, 1]} : vector<64x256xf32> to vector<8x256xf32>
    %cst_9 = arith.constant dense<0.000000e+00> : vector<8x256xf32>
    %10 = tpu.matmul %7, %0, %cst_9 {dimension_numbers = #tpu.dot_dimension_numbers<[1], [0], [0], [1], [0, 0, 1, 1], [], []>} : vector<8x64xf32>, vector<64x256xf32>, vector<8x256xf32> -> vector<8x256xf32>
    %11 = arith.addf %9, %10 : vector<8x256xf32>
    %12 = vector.extract_strided_slice %11 {offsets = [0, 0], sizes = [8, 192], strides = [1, 1]} : vector<8x256xf32> to vector<8x192xf32>
    %13 = arith.negf %12 : vector<8x192xf32>
    %14 = math.exp %13 : vector<8x192xf32>
    %cst_10 = arith.constant 1.000000e+00 : f32
    %15 = vector.broadcast %cst_10 : f32 to vector<8x192xf32>
    %16 = arith.addf %15, %14 : vector<8x192xf32>
    %17 = arith.divf %15, %16 : vector<8x192xf32>
    %18 = vector.extract_strided_slice %11 {offsets = [0, 192], sizes = [8, 64], strides = [1, 1]} : vector<8x256xf32> to vector<8x64xf32>
    %19 = math.tanh %18 : vector<8x64xf32>
    %20 = vector.extract_strided_slice %17 {offsets = [0, 0], sizes = [8, 64], strides = [1, 1]} : vector<8x192xf32> to vector<8x64xf32>
    %21 = vector.extract_strided_slice %17 {offsets = [0, 64], sizes = [8, 64], strides = [1, 1]} : vector<8x192xf32> to vector<8x64xf32>
    %22 = vector.extract_strided_slice %17 {offsets = [0, 128], sizes = [8, 64], strides = [1, 1]} : vector<8x192xf32> to vector<8x64xf32>
    %23 = arith.mulf %21, %8 : vector<8x64xf32>
    %24 = arith.mulf %20, %19 : vector<8x64xf32>
    %25 = arith.addf %23, %24 : vector<8x64xf32>
    %26 = math.tanh %25 : vector<8x64xf32>
    %27 = arith.mulf %22, %26 : vector<8x64xf32>
    %28 = vector.extract_strided_slice %6 {offsets = [8, 0], sizes = [8, 256], strides = [1, 1]} : vector<64x256xf32> to vector<8x256xf32>
    %cst_11 = arith.constant dense<0.000000e+00> : vector<8x256xf32>
    %29 = tpu.matmul %27, %0, %cst_11 {dimension_numbers = #tpu.dot_dimension_numbers<[1], [0], [0], [1], [0, 0, 1, 1], [], []>} : vector<8x64xf32>, vector<64x256xf32>, vector<8x256xf32> -> vector<8x256xf32>
    %30 = arith.addf %28, %29 : vector<8x256xf32>
    %31 = vector.extract_strided_slice %30 {offsets = [0, 0], sizes = [8, 192], strides = [1, 1]} : vector<8x256xf32> to vector<8x192xf32>
    %32 = arith.negf %31 : vector<8x192xf32>
    %33 = math.exp %32 : vector<8x192xf32>
    %cst_12 = arith.constant 1.000000e+00 : f32
    %34 = vector.broadcast %cst_12 : f32 to vector<8x192xf32>
    %35 = arith.addf %34, %33 : vector<8x192xf32>
    %36 = arith.divf %34, %35 : vector<8x192xf32>
    %37 = vector.extract_strided_slice %30 {offsets = [0, 192], sizes = [8, 64], strides = [1, 1]} : vector<8x256xf32> to vector<8x64xf32>
    %38 = math.tanh %37 : vector<8x64xf32>
    %39 = vector.extract_strided_slice %36 {offsets = [0, 0], sizes = [8, 64], strides = [1, 1]} : vector<8x192xf32> to vector<8x64xf32>
    %40 = vector.extract_strided_slice %36 {offsets = [0, 64], sizes = [8, 64], strides = [1, 1]} : vector<8x192xf32> to vector<8x64xf32>
    %41 = vector.extract_strided_slice %36 {offsets = [0, 128], sizes = [8, 64], strides = [1, 1]} : vector<8x192xf32> to vector<8x64xf32>
    %42 = arith.mulf %40, %25 : vector<8x64xf32>
    %43 = arith.mulf %39, %38 : vector<8x64xf32>
    %44 = arith.addf %42, %43 : vector<8x64xf32>
    %45 = math.tanh %44 : vector<8x64xf32>
    %46 = arith.mulf %41, %45 : vector<8x64xf32>
    %47 = vector.extract_strided_slice %6 {offsets = [16, 0], sizes = [8, 256], strides = [1, 1]} : vector<64x256xf32> to vector<8x256xf32>
    %cst_13 = arith.constant dense<0.000000e+00> : vector<8x256xf32>
    %48 = tpu.matmul %46, %0, %cst_13 {dimension_numbers = #tpu.dot_dimension_numbers<[1], [0], [0], [1], [0, 0, 1, 1], [], []>} : vector<8x64xf32>, vector<64x256xf32>, vector<8x256xf32> -> vector<8x256xf32>
    %49 = arith.addf %47, %48 : vector<8x256xf32>
    %50 = vector.extract_strided_slice %49 {offsets = [0, 0], sizes = [8, 192], strides = [1, 1]} : vector<8x256xf32> to vector<8x192xf32>
    %51 = arith.negf %50 : vector<8x192xf32>
    %52 = math.exp %51 : vector<8x192xf32>
    %cst_14 = arith.constant 1.000000e+00 : f32
    %53 = vector.broadcast %cst_14 : f32 to vector<8x192xf32>
    %54 = arith.addf %53, %52 : vector<8x192xf32>
    %55 = arith.divf %53, %54 : vector<8x192xf32>
    %56 = vector.extract_strided_slice %49 {offsets = [0, 192], sizes = [8, 64], strides = [1, 1]} : vector<8x256xf32> to vector<8x64xf32>
    %57 = math.tanh %56 : vector<8x64xf32>
    %58 = vector.extract_strided_slice %55 {offsets = [0, 0], sizes = [8, 64], strides = [1, 1]} : vector<8x192xf32> to vector<8x64xf32>
    %59 = vector.extract_strided_slice %55 {offsets = [0, 64], sizes = [8, 64], strides = [1, 1]} : vector<8x192xf32> to vector<8x64xf32>
    %60 = vector.extract_strided_slice %55 {offsets = [0, 128], sizes = [8, 64], strides = [1, 1]} : vector<8x192xf32> to vector<8x64xf32>
    %61 = arith.mulf %59, %44 : vector<8x64xf32>
    %62 = arith.mulf %58, %57 : vector<8x64xf32>
    %63 = arith.addf %61, %62 : vector<8x64xf32>
    %64 = math.tanh %63 : vector<8x64xf32>
    %65 = arith.mulf %60, %64 : vector<8x64xf32>
    %66 = vector.extract_strided_slice %6 {offsets = [24, 0], sizes = [8, 256], strides = [1, 1]} : vector<64x256xf32> to vector<8x256xf32>
    %cst_15 = arith.constant dense<0.000000e+00> : vector<8x256xf32>
    %67 = tpu.matmul %65, %0, %cst_15 {dimension_numbers = #tpu.dot_dimension_numbers<[1], [0], [0], [1], [0, 0, 1, 1], [], []>} : vector<8x64xf32>, vector<64x256xf32>, vector<8x256xf32> -> vector<8x256xf32>
    %68 = arith.addf %66, %67 : vector<8x256xf32>
    %69 = vector.extract_strided_slice %68 {offsets = [0, 0], sizes = [8, 192], strides = [1, 1]} : vector<8x256xf32> to vector<8x192xf32>
    %70 = arith.negf %69 : vector<8x192xf32>
    %71 = math.exp %70 : vector<8x192xf32>
    %cst_16 = arith.constant 1.000000e+00 : f32
    %72 = vector.broadcast %cst_16 : f32 to vector<8x192xf32>
    %73 = arith.addf %72, %71 : vector<8x192xf32>
    %74 = arith.divf %72, %73 : vector<8x192xf32>
    %75 = vector.extract_strided_slice %68 {offsets = [0, 192], sizes = [8, 64], strides = [1, 1]} : vector<8x256xf32> to vector<8x64xf32>
    %76 = math.tanh %75 : vector<8x64xf32>
    %77 = vector.extract_strided_slice %74 {offsets = [0, 0], sizes = [8, 64], strides = [1, 1]} : vector<8x192xf32> to vector<8x64xf32>
    %78 = vector.extract_strided_slice %74 {offsets = [0, 64], sizes = [8, 64], strides = [1, 1]} : vector<8x192xf32> to vector<8x64xf32>
    %79 = vector.extract_strided_slice %74 {offsets = [0, 128], sizes = [8, 64], strides = [1, 1]} : vector<8x192xf32> to vector<8x64xf32>
    %80 = arith.mulf %78, %63 : vector<8x64xf32>
    %81 = arith.mulf %77, %76 : vector<8x64xf32>
    %82 = arith.addf %80, %81 : vector<8x64xf32>
    %83 = math.tanh %82 : vector<8x64xf32>
    %84 = arith.mulf %79, %83 : vector<8x64xf32>
    %85 = vector.extract_strided_slice %6 {offsets = [32, 0], sizes = [8, 256], strides = [1, 1]} : vector<64x256xf32> to vector<8x256xf32>
    %cst_17 = arith.constant dense<0.000000e+00> : vector<8x256xf32>
    %86 = tpu.matmul %84, %0, %cst_17 {dimension_numbers = #tpu.dot_dimension_numbers<[1], [0], [0], [1], [0, 0, 1, 1], [], []>} : vector<8x64xf32>, vector<64x256xf32>, vector<8x256xf32> -> vector<8x256xf32>
    %87 = arith.addf %85, %86 : vector<8x256xf32>
    %88 = vector.extract_strided_slice %87 {offsets = [0, 0], sizes = [8, 192], strides = [1, 1]} : vector<8x256xf32> to vector<8x192xf32>
    %89 = arith.negf %88 : vector<8x192xf32>
    %90 = math.exp %89 : vector<8x192xf32>
    %cst_18 = arith.constant 1.000000e+00 : f32
    %91 = vector.broadcast %cst_18 : f32 to vector<8x192xf32>
    %92 = arith.addf %91, %90 : vector<8x192xf32>
    %93 = arith.divf %91, %92 : vector<8x192xf32>
    %94 = vector.extract_strided_slice %87 {offsets = [0, 192], sizes = [8, 64], strides = [1, 1]} : vector<8x256xf32> to vector<8x64xf32>
    %95 = math.tanh %94 : vector<8x64xf32>
    %96 = vector.extract_strided_slice %93 {offsets = [0, 0], sizes = [8, 64], strides = [1, 1]} : vector<8x192xf32> to vector<8x64xf32>
    %97 = vector.extract_strided_slice %93 {offsets = [0, 64], sizes = [8, 64], strides = [1, 1]} : vector<8x192xf32> to vector<8x64xf32>
    %98 = vector.extract_strided_slice %93 {offsets = [0, 128], sizes = [8, 64], strides = [1, 1]} : vector<8x192xf32> to vector<8x64xf32>
    %99 = arith.mulf %97, %82 : vector<8x64xf32>
    %100 = arith.mulf %96, %95 : vector<8x64xf32>
    %101 = arith.addf %99, %100 : vector<8x64xf32>
    %102 = math.tanh %101 : vector<8x64xf32>
    %103 = arith.mulf %98, %102 : vector<8x64xf32>
    %104 = vector.extract_strided_slice %6 {offsets = [40, 0], sizes = [8, 256], strides = [1, 1]} : vector<64x256xf32> to vector<8x256xf32>
    %cst_19 = arith.constant dense<0.000000e+00> : vector<8x256xf32>
    %105 = tpu.matmul %103, %0, %cst_19 {dimension_numbers = #tpu.dot_dimension_numbers<[1], [0], [0], [1], [0, 0, 1, 1], [], []>} : vector<8x64xf32>, vector<64x256xf32>, vector<8x256xf32> -> vector<8x256xf32>
    %106 = arith.addf %104, %105 : vector<8x256xf32>
    %107 = vector.extract_strided_slice %106 {offsets = [0, 0], sizes = [8, 192], strides = [1, 1]} : vector<8x256xf32> to vector<8x192xf32>
    %108 = arith.negf %107 : vector<8x192xf32>
    %109 = math.exp %108 : vector<8x192xf32>
    %cst_20 = arith.constant 1.000000e+00 : f32
    %110 = vector.broadcast %cst_20 : f32 to vector<8x192xf32>
    %111 = arith.addf %110, %109 : vector<8x192xf32>
    %112 = arith.divf %110, %111 : vector<8x192xf32>
    %113 = vector.extract_strided_slice %106 {offsets = [0, 192], sizes = [8, 64], strides = [1, 1]} : vector<8x256xf32> to vector<8x64xf32>
    %114 = math.tanh %113 : vector<8x64xf32>
    %115 = vector.extract_strided_slice %112 {offsets = [0, 0], sizes = [8, 64], strides = [1, 1]} : vector<8x192xf32> to vector<8x64xf32>
    %116 = vector.extract_strided_slice %112 {offsets = [0, 64], sizes = [8, 64], strides = [1, 1]} : vector<8x192xf32> to vector<8x64xf32>
    %117 = vector.extract_strided_slice %112 {offsets = [0, 128], sizes = [8, 64], strides = [1, 1]} : vector<8x192xf32> to vector<8x64xf32>
    %118 = arith.mulf %116, %101 : vector<8x64xf32>
    %119 = arith.mulf %115, %114 : vector<8x64xf32>
    %120 = arith.addf %118, %119 : vector<8x64xf32>
    %121 = math.tanh %120 : vector<8x64xf32>
    %122 = arith.mulf %117, %121 : vector<8x64xf32>
    %123 = vector.extract_strided_slice %6 {offsets = [48, 0], sizes = [8, 256], strides = [1, 1]} : vector<64x256xf32> to vector<8x256xf32>
    %cst_21 = arith.constant dense<0.000000e+00> : vector<8x256xf32>
    %124 = tpu.matmul %122, %0, %cst_21 {dimension_numbers = #tpu.dot_dimension_numbers<[1], [0], [0], [1], [0, 0, 1, 1], [], []>} : vector<8x64xf32>, vector<64x256xf32>, vector<8x256xf32> -> vector<8x256xf32>
    %125 = arith.addf %123, %124 : vector<8x256xf32>
    %126 = vector.extract_strided_slice %125 {offsets = [0, 0], sizes = [8, 192], strides = [1, 1]} : vector<8x256xf32> to vector<8x192xf32>
    %127 = arith.negf %126 : vector<8x192xf32>
    %128 = math.exp %127 : vector<8x192xf32>
    %cst_22 = arith.constant 1.000000e+00 : f32
    %129 = vector.broadcast %cst_22 : f32 to vector<8x192xf32>
    %130 = arith.addf %129, %128 : vector<8x192xf32>
    %131 = arith.divf %129, %130 : vector<8x192xf32>
    %132 = vector.extract_strided_slice %125 {offsets = [0, 192], sizes = [8, 64], strides = [1, 1]} : vector<8x256xf32> to vector<8x64xf32>
    %133 = math.tanh %132 : vector<8x64xf32>
    %134 = vector.extract_strided_slice %131 {offsets = [0, 0], sizes = [8, 64], strides = [1, 1]} : vector<8x192xf32> to vector<8x64xf32>
    %135 = vector.extract_strided_slice %131 {offsets = [0, 64], sizes = [8, 64], strides = [1, 1]} : vector<8x192xf32> to vector<8x64xf32>
    %136 = vector.extract_strided_slice %131 {offsets = [0, 128], sizes = [8, 64], strides = [1, 1]} : vector<8x192xf32> to vector<8x64xf32>
    %137 = arith.mulf %135, %120 : vector<8x64xf32>
    %138 = arith.mulf %134, %133 : vector<8x64xf32>
    %139 = arith.addf %137, %138 : vector<8x64xf32>
    %140 = math.tanh %139 : vector<8x64xf32>
    %141 = arith.mulf %136, %140 : vector<8x64xf32>
    %142 = vector.extract_strided_slice %6 {offsets = [56, 0], sizes = [8, 256], strides = [1, 1]} : vector<64x256xf32> to vector<8x256xf32>
    %cst_23 = arith.constant dense<0.000000e+00> : vector<8x256xf32>
    %143 = tpu.matmul %141, %0, %cst_23 {dimension_numbers = #tpu.dot_dimension_numbers<[1], [0], [0], [1], [0, 0, 1, 1], [], []>} : vector<8x64xf32>, vector<64x256xf32>, vector<8x256xf32> -> vector<8x256xf32>
    %144 = arith.addf %142, %143 : vector<8x256xf32>
    %145 = vector.extract_strided_slice %144 {offsets = [0, 0], sizes = [8, 192], strides = [1, 1]} : vector<8x256xf32> to vector<8x192xf32>
    %146 = arith.negf %145 : vector<8x192xf32>
    %147 = math.exp %146 : vector<8x192xf32>
    %cst_24 = arith.constant 1.000000e+00 : f32
    %148 = vector.broadcast %cst_24 : f32 to vector<8x192xf32>
    %149 = arith.addf %148, %147 : vector<8x192xf32>
    %150 = arith.divf %148, %149 : vector<8x192xf32>
    %151 = vector.extract_strided_slice %144 {offsets = [0, 192], sizes = [8, 64], strides = [1, 1]} : vector<8x256xf32> to vector<8x64xf32>
    %152 = math.tanh %151 : vector<8x64xf32>
    %153 = vector.extract_strided_slice %150 {offsets = [0, 0], sizes = [8, 64], strides = [1, 1]} : vector<8x192xf32> to vector<8x64xf32>
    %154 = vector.extract_strided_slice %150 {offsets = [0, 64], sizes = [8, 64], strides = [1, 1]} : vector<8x192xf32> to vector<8x64xf32>
    %155 = vector.extract_strided_slice %150 {offsets = [0, 128], sizes = [8, 64], strides = [1, 1]} : vector<8x192xf32> to vector<8x64xf32>
    %156 = arith.mulf %154, %139 : vector<8x64xf32>
    %157 = arith.mulf %153, %152 : vector<8x64xf32>
    %158 = arith.addf %156, %157 : vector<8x64xf32>
    %159 = math.tanh %158 : vector<8x64xf32>
    %160 = arith.mulf %155, %159 : vector<8x64xf32>
    %c0_25 = arith.constant 0 : index
    %c0_26 = arith.constant 0 : index
    %161 = vector.load %arg4[%c0_25, %c0_26] : memref<64x2xf32, #tpu.memory_space<vmem>>, vector<64x2xf32>
    %cst_27 = arith.constant dense<0.000000e+00> : vector<8x2xf32>
    %162 = tpu.matmul %160, %161, %cst_27 {dimension_numbers = #tpu.dot_dimension_numbers<[1], [0], [0], [1], [0, 0, 1, 1], [], []>} : vector<8x64xf32>, vector<64x2xf32>, vector<8x2xf32> -> vector<8x2xf32>
    %c0_28 = arith.constant 0 : index
    %c0_29 = arith.constant 0 : index
    %163 = vector.load %arg5[%c0_28, %c0_29] : memref<1x2xf32, #tpu.memory_space<vmem>>, vector<1x2xf32>
    %164 = vector.broadcast %163 : vector<1x2xf32> to vector<8x2xf32>
    %165 = arith.addf %162, %164 : vector<8x2xf32>
    %c0_30 = arith.constant 0 : index
    %c0_31 = arith.constant 0 : index
    %166 = vector.load %arg6[%c0_30, %c0_31] : memref<8x2xf32, #tpu.memory_space<vmem>>, vector<8x2xf32>
    tpu.vector_store %arg6[%c0_30, %c0_31], %165 {strides = array<i32>} : memref<8x2xf32, #tpu.memory_space<vmem>>, vector<8x2xf32>,
    %c0_32 = arith.constant 0 : index
    %c0_33 = arith.constant 0 : index
    %167 = vector.load %arg7[%c0_32, %c0_33] : memref<8x64xf32, #tpu.memory_space<vmem>>, vector<8x64xf32>
    tpu.vector_store %arg7[%c0_32, %c0_33], %160 {strides = array<i32>} : memref<8x64xf32, #tpu.memory_space<vmem>>, vector<8x64xf32>,
    %c0_34 = arith.constant 0 : index
    %c0_35 = arith.constant 0 : index
    %168 = vector.load %arg8[%c0_34, %c0_35] : memref<8x64xf32, #tpu.memory_space<vmem>>, vector<8x64xf32>
    tpu.vector_store %arg8[%c0_34, %c0_35], %158 {strides = array<i32>} : memref<8x64xf32, #tpu.memory_space<vmem>>, vector<8x64xf32>,
    return
  }
}

</mosaic_0001>

<bundles_post_ra>
// kernel: lstm_model_forward.1
= control target key start
LH: loop header
LB: loop body
LE: loop exit
PB: predicated region body
PF: predicated region fallthrough
CT: control target
= control target key end

     0   :  { %v1328_v3 = vmov 0.0   ;;  %vm89_vm0 = vcmask 1045504   ;;  %vm64_vm1 = vcmask 48128   ;;  %v54_v20 = vlaneseq  ;;  %s1329_s21 = smov 64   ;;  %s1770_s2 = inlined_call_operand.vmem [shape: f32[64,256], index: 2, kind: input, shape index: {}]   ;;  %s1771_s1 = inlined_call_operand.vmem [shape: f32[6,256], index: 1, kind: input, shape index: {}]   ;;  %s1772_s0 = inlined_call_operand.vmem [shape: f32[64,6], index: 0, kind: input, shape index: {}]   ;;  %s1773_s3 = inlined_call_operand.vmem [shape: f32[1,256], index: 3, kind: input, shape index: {}]   ;;  %s1774_s4 = inlined_call_operand.vmem [shape: f32[64,2], index: 4, kind: input, shape index: {}]   ;;  %s1775_s8 = inlined_call_operand.vmem [shape: f32[8,64], index: 8, kind: output, shape index: {2}]   ;;  %s1776_s7 = inlined_call_operand.vmem [shape: f32[8,64], index: 7, kind: output, shape index: {1}]   ;;  %s1777_s5 = inlined_call_operand.vmem [shape: f32[1,2], index: 5, kind: input, shape index: {}]   ;;  %s1778_s6 = inlined_call_operand.vmem [shape: f32[8,2], index: 6, kind: output, shape index: {0}]  }
   0x1   :  { %v1379_v0 = vld [vmem:[%s1770_s2 + $0x78] sm:$0xff]  ;;  %v1384_v1 = vld [vmem:[%s1770_s2 + $0x70] sm:$0xff]  ;;  %v1389_v2 = vld [vmem:[%s1770_s2 + $0x68] sm:$0xff]  ;;  %160 = vmatprep.mubr.f32.mxu0 %v1328_v3  ;;  %277 = vmatprep.mubr.f32.mxu1 %v1328_v3  ;;  %vm209_vm2 = vcmask 523264   ;;  %vm1330_vm3 = vmmov 0   ;;  %vm1146_vm4 = vcmask 15360  }
   0x2   :  { %229 = vmatprep.subr.mxu1 %v1379_v0  ;;  %v1397_v4 = vld [vmem:[%s1770_s2 + $0x60] sm:$0xff]  ;;  %v1403_v5 = vld [vmem:[%s1770_s2 + $0x58] sm:$0xff]  ;;  %v1409_v6 = vld [vmem:[%s1770_s2 + $0x50] sm:$0xff]  ;;  %v55_v21 = vshrl.u32 %v54_v20, 7 }
   0x3   :  { %230 = vmatpush1.msra.mxu1 %v1384_v1  ;;  %v51_v7 = vld [vmem:[%s1771_s1 + $0x8] sm:$0x3f]  ;;  %v50_v9 = vld [vmem:[%s1771_s1] sm:$0x3f]  ;;  %v1436_v12 = vld [vmem:[%s1770_s2 + $0x38] sm:$0xff] }
   0x4   :  { %231 = vmatprep.subr.mxu1 %v1389_v2  ;;  %v1418_v8 = vld [vmem:[%s1770_s2 + $0x48] sm:$0xff]  ;;  %1166 = vmatprep.subr.msk.mxu0 %vm89_vm0, %v51_v7  ;;  %v42_v10 = vld [vmem:[%s1772_s0] sm:$0xff]  ;;  %v1443_v13 = vld [vmem:[%s1770_s2 + $0x30] sm:$0xff]  ;;  %v56_v22 = vsub.s32 0, %v55_v21  ;;  %v60_v25 = vsub.s32 1, %v55_v21 }
   0x5   :  { %232 = vmatpush1.msra.mxu1 %v1397_v4  ;;  %v1430_v11 = vld [vmem:[%s1770_s2 + $0x40] sm:$0xff]  ;;  %1167 = vmatpush1.msk.msra.mxu0 %vm89_vm0, %v50_v9  ;;  %v1450_v14 = vld [vmem:[%s1770_s2 + $0x28] sm:$0xff]  ;;  %v1464_v16 = vld [vmem:[%s1770_s2 + $0x18] sm:$0xff] }
   0x6   :  { %233 = vmatprep.subr.mxu1 %v1403_v5  ;;  %1168 = vmatmul.mubr.msk.f32.vlgmr.msra.gmra.mxu0 %vm64_vm1, %v42_v10  ;;  %v1457_v15 = vld [vmem:[%s1770_s2 + $0x20] sm:$0xff]  ;;  %v1471_v17 = vld [vmem:[%s1770_s2 + $0x10] sm:$0xff]  ;;  %v1478_v18 = vld [vmem:[%s1770_s2 + $0x8] sm:$0xff] }
   0x7   :  { %234 = vmatpush1.msra.mxu1 %v1409_v6  ;;  %166 = vmatprep.mubr.f32.mxu0 %v1328_v3  ;;  %v1485_v19 = vld [vmem:[%s1770_s2] sm:$0xff]  ;;  %v43_v42 = vld [vmem:[%s1772_s0 + $0x8] sm:$0xff]  ;;  %v44_v21 = vld [vmem:[%s1772_s0 + $0x10] sm:$0xff] }
   0x8   :  { %235 = vmatprep.subr.mxu1 %v1418_v8  ;;  %441 = vmatprep.subr.mxu0 %v1379_v0  ;;  %v52_v23 = vld [vmem:[%s1773_s3] sm:$0x3] }
   0x9   :  { %236 = vmatpush1.msra.mxu1 %v1430_v11  ;;  %442 = vmatpush1.msra.mxu0 %v1384_v1  ;;  %v1524_v24 = vrot.slane %v52_v23, %v56_v22  ;;  %v1527_v28 = vrot.slane %v52_v23, %v60_v25  ;;  %v45_v22 = vld [vmem:[%s1772_s0 + $0x18] sm:$0xff]  ;;  %v46_v23 = vld [vmem:[%s1772_s0 + $0x20] sm:$0xff]  ;;  %v47_v25 = vld [vmem:[%s1772_s0 + $0x28] sm:$0xff] }
   0xa   :  { %237 = vmatprep.subr.mxu1 %v1436_v12  ;;  %443 = vmatprep.subr.mxu0 %v1389_v2 }
   0xb   :  { %238 = vmatpush1.msra.mxu1 %v1443_v13  ;;  %444 = vmatpush1.msra.mxu0 %v1397_v4 }
   0xc   :  { %239 = vmatprep.subr.mxu1 %v1450_v14  ;;  %445 = vmatprep.subr.mxu0 %v1403_v5 }
   0xd   :  { %240 = vmatpush1.msra.mxu1 %v1457_v15  ;;  %446 = vmatpush1.msra.mxu0 %v1409_v6 }
   0xe   :  { %241 = vmatprep.subr.mxu1 %v1464_v16  ;;  %447 = vmatprep.subr.mxu0 %v1418_v8 }
   0xf   :  { %242 = vmatpush1.msra.mxu1 %v1471_v17  ;;  %448 = vmatpush1.msra.mxu0 %v1430_v11 }
  0x10   :  { %243 = vmatprep.subr.mxu1 %v1478_v18  ;;  %449 = vmatprep.subr.mxu0 %v1436_v12 }
  0x11   :  { %244 = vmatpush1.msra.mxu1 %v1485_v19  ;;  %450 = vmatpush1.msra.mxu0 %v1443_v13 }
  0x12   :  { %278 = vmatmul.mubr.f32.vlgmr.msra.gmra.mxu1 %v1328_v3  ;;  %335 = vmatprep.subr.mxu1 %v1379_v0 }
  0x13   :  { %336 = vmatpush1.msra.mxu1 %v1384_v1  ;;  %383 = vmatprep.mubr.f32.mxu1 %v1328_v3 }
  0x14   :  { %337 = vmatprep.subr.mxu1 %v1389_v2  ;;  %451 = vmatprep.subr.mxu0 %v1450_v14 }
  0x15   :  { %338 = vmatpush1.msra.mxu1 %v1397_v4  ;;  %452 = vmatpush1.msra.mxu0 %v1457_v15 }
  0x16   :  { %339 = vmatprep.subr.mxu1 %v1403_v5  ;;  %453 = vmatprep.subr.mxu0 %v1464_v16 }
  0x17   :  { %340 = vmatpush1.msra.mxu1 %v1409_v6  ;;  %454 = vmatpush1.msra.mxu0 %v1471_v17 }
  0x18   :  { %341 = vmatprep.subr.mxu1 %v1418_v8  ;;  %455 = vmatprep.subr.mxu0 %v1478_v18 }
  0x19   :  { %342 = vmatpush1.msra.mxu1 %v1430_v11  ;;  %456 = vmatpush1.msra.mxu0 %v1485_v19 }
  0x1a   :  { %343 = vmatprep.subr.mxu1 %v1436_v12  ;;  %653 = vmatprep.subr.mxu0 %v1379_v0 }
  0x1b   :  { %344 = vmatpush1.msra.mxu1 %v1443_v13  ;;  %1169 = vmatmul.mubr.msk.f32.gmra.mxu0 %vm64_vm1, %v43_v42 }
  0x1c   :  { %345 = vmatprep.subr.mxu1 %v1450_v14  ;;  %172 = vmatprep.mubr.f32.mxu0 %v1328_v3 }
  0x1d   :  { %346 = vmatpush1.msra.mxu1 %v1457_v15 }
  0x1e   :  { %347 = vmatprep.subr.mxu1 %v1464_v16 }
  0x1f   :  { %348 = vmatpush1.msra.mxu1 %v1471_v17  ;;  %1170 = vmatmul.mubr.msk.f32.gmra.mxu0 %vm64_vm1, %v44_v21 }
  0x20   :  { %349 = vmatprep.subr.mxu1 %v1478_v18  ;;  %178 = vmatprep.mubr.f32.mxu0 %v1328_v3 }
  0x21   :  { %350 = vmatpush1.msra.mxu1 %v1485_v19 }
  0x22   :  { %547 = vmatprep.subr.mxu1 %v1379_v0 }
  0x23   :  { %1171 = vmatmul.mubr.msk.f32.gmra.mxu0 %vm64_vm1, %v45_v22 }
  0x24   :  { %184 = vmatprep.mubr.f32.mxu0 %v1328_v3 }
  0x27   :  { %1172 = vmatmul.mubr.msk.f32.gmra.mxu0 %vm64_vm1, %v46_v23 }
  0x28   :  { %190 = vmatprep.mubr.f32.mxu0 %v1328_v3 }
  0x2b   :  { %1173 = vmatmul.mubr.msk.f32.gmra.mxu0 %vm64_vm1, %v47_v25 }
  0x2c   :  { %196 = vmatprep.mubr.f32.mxu0 %v1328_v3 }
  0xc6   :  { %v162_v26 = vpop.f32.mrf.mxu0 }
  0xc7   :  { %v163_v27 = vadd.f32 %v162_v26, %v1524_v24  ;;  %v48_v26 = vld [vmem:[%s1772_s0 + $0x30] sm:$0xff] }
  0xc8   :  { %v164_v29 = vpop.f32.mrf.mxu0  ;;  %1174 = vmatmul.mubr.msk.f32.gmra.mxu0 %vm64_vm1, %v48_v26 }
  0xc9   :  { %v165_v31 = vadd.f32 %v164_v29, %v1527_v28  ;;  %202 = vmatprep.mubr.f32.mxu0 %v1328_v3 }
  0xd2   :  { %v279_v30 = vpop.f32.mrf.mxu1 }
  0xd3   :  { %v284_v32 = vadd.f32 %v279_v30, %v163_v27  ;;  %v49_v27 = vld [vmem:[%s1772_s0 + $0x38] sm:$0xff] }
  0xd4   :  { %v281_v33 = vpop.f32.mrf.mxu1  ;;  %1175 = vmatmul.mubr.msk.f32.gmra.mxu0 %vm64_vm1, %v49_v27 }
  0xd5   :  { %v285_v34 = vadd.f32 %v281_v33, %v165_v31  ;;  %v1176_v36 = vmul.f32 -1.442695, %v284_v32  ;;  %489 = vmatprep.mubr.f32.mxu0 %v1328_v3 }
  0xd7   :  { %1232 = vtanh.f32 %v285_v34  ;;  %v1177_v47 = vmul.f32 -1.442695, %v285_v34 }
  0xd8   :  { %1234 = vpow2.f32 %v1176_v36 }
  0xdb   :  { %v168_v53 = vpop.f32.mrf.mxu0 }
  0xdc   :  { %v169_v54 = vadd.f32 %v168_v53, %v1524_v24 }
  0xdd   :  { %v170_v55 = vpop.f32.mrf.mxu0 }
  0xde   :  { %v171_v57 = vadd.f32 %v170_v55, %v1527_v28 }
  0xe4   :  { %v1233_v35 = vpop.eup %1232 }
  0xe5   :  { %301 = vrot.lane.b32.xlu0 %v1233_v35, %s1329_s21  ;;  %v1235_v37 = vpop.eup %1234 }
  0xe6   :  { %v292_v38 = vadd.f32 1.0, %v1235_v37 }
  0xe8   :  { %1236 = vrcp.f32 %v292_v38 }
  0xf5   :  { %v1237_v39 = vpop.eup %1236 }
  0xf6   :  { %v299_v43 = vmul.f32 0.0, %v1237_v39 }
 0x157   :  { %v302_v40 = vpop.permute.xlu0 %301 }
 0x158   :  { %v304_v41 = vmul.f32 %v1237_v39, %v302_v40  ;;  %v174_v39 = vpop.f32.mrf.mxu0 }
 0x15a   :  { %306 = vrot.lane.b32.xlu0 %v304_v41, %s1329_s21  ;;  %v176_v40 = vpop.f32.mrf.mxu0 }
 0x15b   :  { %v177_v53 = vadd.f32 %v176_v40, %v1527_v28 }
 0x15c   :  { %v180_v41 = vpop.f32.mrf.mxu0 }
 0x15e   :  { %v182_v42 = vpop.f32.mrf.mxu0 }
 0x1cc   :  { %v307_v44 = vpop.permute.xlu0 %306 }
 0x1cd   :  { %v1537_v45 = vadd.f32 %v307_v44, %v299_v43  ;;  %v1613_v43 = vpop.f32.mrf.mxu0 }
 0x1cf   :  { %1238 = vtanh.f32 %v1537_v45  ;;  %v1615_v44 = vpop.f32.mrf.mxu0 }
 0x1d0   :  { %1240 = vpow2.f32 %v1177_v47 }
 0x1dc   :  { %v1239_v46 = vpop.eup %1238 }
 0x1dd   :  { %312 = vrot.lane.b32.xlu1 %v1239_v46, %s1329_s21  ;;  %v1241_v48 = vpop.eup %1240 }
 0x1de   :  { %v293_v49 = vadd.f32 1.0, %v1241_v48 }
 0x1e0   :  { %1242 = vrcp.f32 %v293_v49 }
 0x1ed   :  { %v1243_v50 = vpop.eup %1242 }
 0x24f   :  { %v313_v51 = vpop.permute.xlu1 %312 }
 0x250   :  { %v315_v52 = vmul.f32 %v1243_v50, %v313_v51  ;;  %v175_v51 = vadd.f32 %v174_v39, %v1524_v24 }
 0x252   :  { %1178 = vmatmul.mubr.msk.f32.vlgmr.msra.gmra.mxu1 %vm209_vm2, %v315_v52 }
 0x253   :  { %548 = vmatpush1.msra.mxu1 %v1384_v1  ;;  %595 = vmatprep.mubr.f32.mxu1 %v1328_v3 }
 0x254   :  { %549 = vmatprep.subr.mxu1 %v1389_v2 }
 0x255   :  { %550 = vmatpush1.msra.mxu1 %v1397_v4 }
 0x256   :  { %551 = vmatprep.subr.mxu1 %v1403_v5 }
 0x257   :  { %552 = vmatpush1.msra.mxu1 %v1409_v6 }
 0x258   :  { %553 = vmatprep.subr.mxu1 %v1418_v8 }
 0x259   :  { %554 = vmatpush1.msra.mxu1 %v1430_v11 }
 0x25a   :  { %555 = vmatprep.subr.mxu1 %v1436_v12 }
 0x25b   :  { %556 = vmatpush1.msra.mxu1 %v1443_v13 }
 0x25c   :  { %557 = vmatprep.subr.mxu1 %v1450_v14 }
 0x25d   :  { %558 = vmatpush1.msra.mxu1 %v1457_v15 }
 0x25e   :  { %559 = vmatprep.subr.mxu1 %v1464_v16 }
 0x25f   :  { %560 = vmatpush1.msra.mxu1 %v1471_v17 }
 0x260   :  { %561 = vmatprep.subr.mxu1 %v1478_v18 }
 0x261   :  { %562 = vmatpush1.msra.mxu1 %v1485_v19 }
 0x262   :  { %759 = vmatprep.subr.mxu1 %v1379_v0 }
 0x312   :  { %v385_v56 = vpop.f32.mrf.mxu1 }
 0x313   :  { %v390_v58 = vadd.f32 %v385_v56, %v169_v54 }
 0x314   :  { %v387_v59 = vpop.f32.mrf.mxu1 }
 0x315   :  { %v391_v60 = vadd.f32 %v387_v59, %v171_v57  ;;  %v1179_v62 = vmul.f32 -1.442695, %v390_v58 }
 0x317   :  { %1244 = vtanh.f32 %v391_v60  ;;  %v1180_v33 = vmul.f32 -1.442695, %v391_v60 }
 0x318   :  { %1246 = vpow2.f32 %v1179_v62 }
 0x324   :  { %v1245_v61 = vpop.eup %1244 }
 0x325   :  { %407 = vrot.lane.b32.xlu1 %v1245_v61, %s1329_s21  ;;  %v1247_v63 = vpop.eup %1246 }
 0x326   :  { %v398_v7 = vadd.f32 1.0, %v1247_v63 }
 0x328   :  { %1248 = vrcp.f32 %v398_v7 }
 0x335   :  { %v1249_v9 = vpop.eup %1248 }
 0x336   :  { %v405_v29 = vmul.f32 %v1249_v9, %v1537_v45  ;;  %v1617_v45 = vpop.f32.mrf.mxu0 }
 0x338   :  { %v1619_v46 = vpop.f32.mrf.mxu0 }
 0x33a   :  { %v1621_v47 = vpop.f32.mrf.mxu0 }
 0x33c   :  { %v1623_v48 = vpop.f32.mrf.mxu0 }
 0x33e   :  { %v1625_v49 = vpop.f32.mrf.mxu0 }
 0x340   :  { %v1627_v50 = vpop.f32.mrf.mxu0 }
 0x397   :  { %v408_v10 = vpop.permute.xlu1 %407 }
 0x398   :  { %v410_v20 = vmul.f32 %v1249_v9, %v408_v10 }
 0x39a   :  { %412 = vrot.lane.b32.xlu0 %v410_v20, %s1329_s21 }
 0x40c   :  { %v413_v30 = vpop.permute.xlu0 %412 }
 0x40d   :  { %v415_v31 = vadd.f32 %v413_v30, %v405_v29  ;;  %v181_v29 = vadd.f32 %v180_v41, %v1524_v24 }
 0x40f   :  { %1250 = vtanh.f32 %v415_v31 }
 0x410   :  { %1252 = vpow2.f32 %v1180_v33 }
 0x41c   :  { %v1251_v32 = vpop.eup %1250 }
 0x41d   :  { %418 = vrot.lane.b32.xlu1 %v1251_v32, %s1329_s21  ;;  %v1253_v34 = vpop.eup %1252 }
 0x41e   :  { %v399_v35 = vadd.f32 1.0, %v1253_v34 }
 0x420   :  { %1254 = vrcp.f32 %v399_v35 }
 0x42d   :  { %v1255_v36 = vpop.eup %1254 }
 0x48f   :  { %v419_v37 = vpop.permute.xlu1 %418 }
 0x490   :  { %v421_v38 = vmul.f32 %v1255_v36, %v419_v37 }
 0x492   :  { %1181 = vmatmul.mubr.msk.f32.vlgmr.msra.gmra.mxu0 %vm209_vm2, %v421_v38 }
 0x493   :  { %654 = vmatpush1.msra.mxu0 %v1384_v1  ;;  %701 = vmatprep.mubr.f32.mxu0 %v1328_v3 }
 0x494   :  { %655 = vmatprep.subr.mxu0 %v1389_v2 }
 0x495   :  { %656 = vmatpush1.msra.mxu0 %v1397_v4 }
 0x496   :  { %657 = vmatprep.subr.mxu0 %v1403_v5 }
 0x497   :  { %658 = vmatpush1.msra.mxu0 %v1409_v6 }
 0x498   :  { %659 = vmatprep.subr.mxu0 %v1418_v8 }
 0x499   :  { %660 = vmatpush1.msra.mxu0 %v1430_v11 }
 0x49a   :  { %661 = vmatprep.subr.mxu0 %v1436_v12 }
 0x49b   :  { %662 = vmatpush1.msra.mxu0 %v1443_v13 }
 0x49c   :  { %663 = vmatprep.subr.mxu0 %v1450_v14 }
 0x49d   :  { %664 = vmatpush1.msra.mxu0 %v1457_v15 }
 0x49e   :  { %665 = vmatprep.subr.mxu0 %v1464_v16 }
 0x49f   :  { %666 = vmatpush1.msra.mxu0 %v1471_v17 }
 0x4a0   :  { %667 = vmatprep.subr.mxu0 %v1478_v18 }
 0x4a1   :  { %668 = vmatpush1.msra.mxu0 %v1485_v19 }
 0x4a2   :  { %865 = vmatprep.subr.mxu0 %v1379_v0 }
 0x552   :  { %v491_v52 = vpop.f32.mrf.mxu0 }
 0x553   :  { %v496_v54 = vadd.f32 %v491_v52, %v175_v51 }
 0x554   :  { %v493_v55 = vpop.f32.mrf.mxu0 }
 0x555   :  { %v497_v56 = vadd.f32 %v493_v55, %v177_v53  ;;  %v1182_v58 = vmul.f32 -1.442695, %v496_v54 }
 0x557   :  { %1256 = vtanh.f32 %v497_v56  ;;  %v1183_v21 = vmul.f32 -1.442695, %v497_v56 }
 0x558   :  { %1258 = vpow2.f32 %v1182_v58 }
 0x564   :  { %v1257_v57 = vpop.eup %1256 }
 0x565   :  { %513 = vrot.lane.b32.xlu0 %v1257_v57, %s1329_s21  ;;  %v1259_v59 = vpop.eup %1258 }
 0x566   :  { %v504_v60 = vadd.f32 1.0, %v1259_v59  ;;  %v187_v59 = vadd.f32 %v1613_v43, %v1524_v24 }
 0x568   :  { %1260 = vrcp.f32 %v504_v60 }
 0x575   :  { %v1261_v61 = vpop.eup %1260 }
 0x576   :  { %v511_v7 = vmul.f32 %v1261_v61, %v415_v31  ;;  %v183_v31 = vadd.f32 %v182_v42, %v1527_v28 }
 0x5d7   :  { %v514_v62 = vpop.permute.xlu0 %513 }
 0x5d8   :  { %v516_v63 = vmul.f32 %v1261_v61, %v514_v62  ;;  %v189_v61 = vadd.f32 %v1615_v44, %v1527_v28 }
 0x5da   :  { %518 = vrot.lane.b32.xlu1 %v516_v63, %s1329_s21 }
 0x64c   :  { %v519_v9 = vpop.permute.xlu1 %518 }
 0x64d   :  { %v521_v10 = vadd.f32 %v519_v9, %v511_v7 }
 0x64f   :  { %1262 = vtanh.f32 %v521_v10 }
 0x650   :  { %1264 = vpow2.f32 %v1183_v21 }
 0x65c   :  { %v1263_v20 = vpop.eup %1262 }
 0x65d   :  { %524 = vrot.lane.b32.xlu0 %v1263_v20, %s1329_s21  ;;  %v1265_v22 = vpop.eup %1264 }
 0x65e   :  { %v505_v23 = vadd.f32 1.0, %v1265_v22 }
 0x660   :  { %1266 = vrcp.f32 %v505_v23 }
 0x66d   :  { %v1267_v25 = vpop.eup %1266 }
 0x6cf   :  { %v525_v26 = vpop.permute.xlu0 %524 }
 0x6d0   :  { %v527_v27 = vmul.f32 %v1267_v25, %v525_v26 }
 0x6d2   :  { %1184 = vmatmul.mubr.msk.f32.vlgmr.msra.gmra.mxu1 %vm209_vm2, %v527_v27 }
 0x6d3   :  { %760 = vmatpush1.msra.mxu1 %v1384_v1  ;;  %807 = vmatprep.mubr.f32.mxu1 %v1328_v3 }
 0x6d4   :  { %761 = vmatprep.subr.mxu1 %v1389_v2 }
 0x6d5   :  { %762 = vmatpush1.msra.mxu1 %v1397_v4 }
 0x6d6   :  { %763 = vmatprep.subr.mxu1 %v1403_v5 }
 0x6d7   :  { %764 = vmatpush1.msra.mxu1 %v1409_v6 }
 0x6d8   :  { %765 = vmatprep.subr.mxu1 %v1418_v8 }
 0x6d9   :  { %766 = vmatpush1.msra.mxu1 %v1430_v11 }
 0x6da   :  { %767 = vmatprep.subr.mxu1 %v1436_v12 }
 0x6db   :  { %768 = vmatpush1.msra.mxu1 %v1443_v13 }
 0x6dc   :  { %769 = vmatprep.subr.mxu1 %v1450_v14 }
 0x6dd   :  { %770 = vmatpush1.msra.mxu1 %v1457_v15 }
 0x6de   :  { %771 = vmatprep.subr.mxu1 %v1464_v16 }
 0x6df   :  { %772 = vmatpush1.msra.mxu1 %v1471_v17 }
 0x6e0   :  { %773 = vmatprep.subr.mxu1 %v1478_v18 }
 0x6e1   :  { %774 = vmatpush1.msra.mxu1 %v1485_v19 }
 0x6e2   :  { %971 = vmatprep.subr.mxu1 %v1379_v0 }
 0x792   :  { %v597_v30 = vpop.f32.mrf.mxu1 }
 0x793   :  { %v602_v32 = vadd.f32 %v597_v30, %v181_v29 }
 0x794   :  { %v599_v33 = vpop.f32.mrf.mxu1 }
 0x795   :  { %v603_v34 = vadd.f32 %v599_v33, %v183_v31  ;;  %v1185_v36 = vmul.f32 -1.442695, %v602_v32 }
 0x797   :  { %1268 = vtanh.f32 %v603_v34  ;;  %v1186_v53 = vmul.f32 -1.442695, %v603_v34 }
 0x798   :  { %1270 = vpow2.f32 %v1185_v36 }
 0x7a4   :  { %v1269_v35 = vpop.eup %1268 }
 0x7a5   :  { %619 = vrot.lane.b32.xlu1 %v1269_v35, %s1329_s21  ;;  %v1271_v37 = vpop.eup %1270 }
 0x7a6   :  { %v610_v38 = vadd.f32 1.0, %v1271_v37 }
 0x7a8   :  { %1272 = vrcp.f32 %v610_v38 }
 0x7b5   :  { %v1273_v39 = vpop.eup %1272 }
 0x7b6   :  { %v617_v41 = vmul.f32 %v1273_v39, %v521_v10 }
 0x817   :  { %v620_v40 = vpop.permute.xlu1 %619 }
 0x818   :  { %v622_v0 = vmul.f32 %v1273_v39, %v620_v40 }
 0x81a   :  { %624 = vrot.lane.b32.xlu0 %v622_v0, %s1329_s21  ;;  %v199_v0 = vadd.f32 %v1621_v47, %v1524_v24 }
 0x88c   :  { %v625_v51 = vpop.permute.xlu0 %624 }
 0x88d   :  { %v627_v42 = vadd.f32 %v625_v51, %v617_v41  ;;  %v201_v51 = vadd.f32 %v1623_v48, %v1527_v28 }
 0x88f   :  { %1274 = vtanh.f32 %v627_v42 }
 0x890   :  { %1276 = vpow2.f32 %v1186_v53 }
 0x89c   :  { %v1275_v52 = vpop.eup %1274 }
 0x89d   :  { %630 = vrot.lane.b32.xlu1 %v1275_v52, %s1329_s21  ;;  %v1277_v54 = vpop.eup %1276 }
 0x89e   :  { %v611_v55 = vadd.f32 1.0, %v1277_v54 }
 0x8a0   :  { %1278 = vrcp.f32 %v611_v55 }
 0x8ad   :  { %v1279_v56 = vpop.eup %1278 }
 0x90f   :  { %v631_v57 = vpop.permute.xlu1 %630 }
 0x910   :  { %v633_v58 = vmul.f32 %v1279_v56, %v631_v57 }
 0x912   :  { %1187 = vmatmul.mubr.msk.f32.vlgmr.msra.gmra.mxu0 %vm209_vm2, %v633_v58 }
 0x913   :  { %866 = vmatpush1.msra.mxu0 %v1384_v1  ;;  %913 = vmatprep.mubr.f32.mxu0 %v1328_v3 }
 0x914   :  { %867 = vmatprep.subr.mxu0 %v1389_v2 }
 0x915   :  { %868 = vmatpush1.msra.mxu0 %v1397_v4 }
 0x916   :  { %869 = vmatprep.subr.mxu0 %v1403_v5 }
 0x917   :  { %870 = vmatpush1.msra.mxu0 %v1409_v6 }
 0x918   :  { %871 = vmatprep.subr.mxu0 %v1418_v8 }
 0x919   :  { %872 = vmatpush1.msra.mxu0 %v1430_v11 }
 0x91a   :  { %873 = vmatprep.subr.mxu0 %v1436_v12 }
 0x91b   :  { %874 = vmatpush1.msra.mxu0 %v1443_v13 }
 0x91c   :  { %875 = vmatprep.subr.mxu0 %v1450_v14 }
 0x91d   :  { %876 = vmatpush1.msra.mxu0 %v1457_v15 }
 0x91e   :  { %877 = vmatprep.subr.mxu0 %v1464_v16 }
 0x91f   :  { %878 = vmatpush1.msra.mxu0 %v1471_v17 }
 0x920   :  { %879 = vmatprep.subr.mxu0 %v1478_v18 }
 0x921   :  { %880 = vmatpush1.msra.mxu0 %v1485_v19 }
 0x922   :  { %1210 = vmatprep.subr.mxu0 %v1328_v3 }
 0x9d2   :  { %v703_v60 = vpop.f32.mrf.mxu0 }
 0x9d3   :  { %v708_v62 = vadd.f32 %v703_v60, %v187_v59 }
 0x9d4   :  { %v705_v63 = vpop.f32.mrf.mxu0 }
 0x9d5   :  { %v709_v7 = vadd.f32 %v705_v63, %v189_v61  ;;  %v1188_v10 = vmul.f32 -1.442695, %v708_v62 }
 0x9d7   :  { %1280 = vtanh.f32 %v709_v7  ;;  %v1189_v29 = vmul.f32 -1.442695, %v709_v7 }
 0x9d8   :  { %1282 = vpow2.f32 %v1188_v10 }
 0x9e4   :  { %v1281_v9 = vpop.eup %1280 }
 0x9e5   :  { %725 = vrot.lane.b32.xlu0 %v1281_v9, %s1329_s21  ;;  %v1283_v20 = vpop.eup %1282 }
 0x9e6   :  { %v716_v21 = vadd.f32 1.0, %v1283_v20 }
 0x9e8   :  { %1284 = vrcp.f32 %v716_v21 }
 0x9f5   :  { %v1285_v22 = vpop.eup %1284 }
 0x9f6   :  { %v723_v43 = vmul.f32 %v1285_v22, %v627_v42 }
 0xa57   :  { %v726_v23 = vpop.permute.xlu0 %725 }
 0xa58   :  { %v728_v25 = vmul.f32 %v1285_v22, %v726_v23  ;;  %v205_v22 = vadd.f32 %v1625_v49, %v1524_v24  ;;  %v1063_v49 = vld [vmem:[%s1774_s4 + $0x28] sm:$0xff] }
 0xa5a   :  { %730 = vrot.lane.b32.xlu1 %v728_v25, %s1329_s21  ;;  %v207_v25 = vadd.f32 %v1627_v50, %v1527_v28  ;;  %v1062_v50 = vld [vmem:[%s1774_s4 + $0x20] sm:$0xff] }
 0xacc   :  { %v731_v26 = vpop.permute.xlu1 %730 }
 0xacd   :  { %v733_v44 = vadd.f32 %v731_v26, %v723_v43 }
 0xacf   :  { %1286 = vtanh.f32 %v733_v44 }
 0xad0   :  { %1288 = vpow2.f32 %v1189_v29 }
 0xadc   :  { %v1287_v27 = vpop.eup %1286 }
 0xadd   :  { %736 = vrot.lane.b32.xlu0 %v1287_v27, %s1329_s21  ;;  %v1289_v30 = vpop.eup %1288 }
 0xade   :  { %v717_v31 = vadd.f32 1.0, %v1289_v30 }
 0xae0   :  { %1290 = vrcp.f32 %v717_v31 }
 0xaed   :  { %v1291_v32 = vpop.eup %1290 }
 0xb4f   :  { %v737_v33 = vpop.permute.xlu0 %736 }
 0xb50   :  { %v739_v34 = vmul.f32 %v1291_v32, %v737_v33 }
 0xb52   :  { %1190 = vmatmul.mubr.msk.f32.vlgmr.msra.gmra.mxu1 %vm209_vm2, %v739_v34 }
 0xb53   :  { %972 = vmatpush1.msra.mxu1 %v1384_v1  ;;  %1019 = vmatprep.mubr.f32.mxu1 %v1328_v3  ;;  %v193_v1 = vadd.f32 %v1617_v45, %v1524_v24  ;;  %v1065_v24 = vld [vmem:[%s1774_s4 + $0x38] sm:$0xff] }
 0xb54   :  { %973 = vmatprep.subr.mxu1 %v1389_v2 }
 0xb55   :  { %974 = vmatpush1.msra.mxu1 %v1397_v4  ;;  %v195_v4 = vadd.f32 %v1619_v46, %v1527_v28  ;;  %v1064_v28 = vld [vmem:[%s1774_s4 + $0x30] sm:$0xff] }
 0xb56   :  { %975 = vmatprep.subr.mxu1 %v1403_v5 }
 0xb57   :  { %976 = vmatpush1.msra.mxu1 %v1409_v6 }
 0xb58   :  { %977 = vmatprep.subr.mxu1 %v1418_v8 }
 0xb59   :  { %978 = vmatpush1.msra.mxu1 %v1430_v11 }
 0xb5a   :  { %979 = vmatprep.subr.mxu1 %v1436_v12 }
 0xb5b   :  { %980 = vmatpush1.msra.mxu1 %v1443_v13 }
 0xb5c   :  { %981 = vmatprep.subr.mxu1 %v1450_v14 }
 0xb5d   :  { %982 = vmatpush1.msra.mxu1 %v1457_v15 }
 0xb5e   :  { %983 = vmatprep.subr.mxu1 %v1464_v16 }
 0xb5f   :  { %984 = vmatpush1.msra.mxu1 %v1471_v17 }
 0xb60   :  { %985 = vmatprep.subr.mxu1 %v1478_v18 }
 0xb61   :  { %986 = vmatpush1.msra.mxu1 %v1485_v19 }
 0xc12   :  { %v809_v2 = vpop.f32.mrf.mxu1 }
 0xc13   :  { %v814_v5 = vadd.f32 %v809_v2, %v193_v1  ;;  %v1061_v1 = vld [vmem:[%s1774_s4 + $0x18] sm:$0xff]  ;;  %v1060_v2 = vld [vmem:[%s1774_s4 + $0x10] sm:$0xff] }
 0xc14   :  { %v811_v6 = vpop.f32.mrf.mxu1 }
 0xc15   :  { %v815_v8 = vadd.f32 %v811_v6, %v195_v4  ;;  %v1191_v12 = vmul.f32 -1.442695, %v814_v5  ;;  %v1059_v6 = vld [vmem:[%s1774_s4 + $0x8] sm:$0xff] }
 0xc17   :  { %1292 = vtanh.f32 %v815_v8  ;;  %v1192_v35 = vmul.f32 -1.442695, %v815_v8 }
 0xc18   :  { %1294 = vpow2.f32 %v1191_v12 }
 0xc24   :  { %v1293_v11 = vpop.eup %1292 }
 0xc25   :  { %831 = vrot.lane.b32.xlu1 %v1293_v11, %s1329_s21  ;;  %v1295_v13 = vpop.eup %1294  ;;  %v1058_v11 = vld [vmem:[%s1774_s4] sm:$0xff] }
 0xc26   :  { %v822_v14 = vadd.f32 1.0, %v1295_v13 }
 0xc28   :  { %1296 = vrcp.f32 %v822_v14 }
 0xc35   :  { %v1297_v15 = vpop.eup %1296 }
 0xc36   :  { %v829_v18 = vmul.f32 %v1297_v15, %v733_v44 }
 0xc97   :  { %v832_v16 = vpop.permute.xlu1 %831 }
 0xc98   :  { %v834_v17 = vmul.f32 %v1297_v15, %v832_v16 }
 0xc9a   :  { %836 = vrot.lane.b32.xlu0 %v834_v17, %s1329_s21 }
 0xd0c   :  { %v837_v19 = vpop.permute.xlu0 %836 }
 0xd0d   :  { %v839_v45 = vadd.f32 %v837_v19, %v829_v18 }
 0xd0f   :  { %1298 = vtanh.f32 %v839_v45 }
 0xd10   :  { %1300 = vpow2.f32 %v1192_v35 }
 0xd1c   :  { %v1299_v46 = vpop.eup %1298 }
 0xd1d   :  { %842 = vrot.lane.b32.xlu1 %v1299_v46, %s1329_s21  ;;  %v1301_v36 = vpop.eup %1300 }
 0xd1e   :  { %v823_v37 = vadd.f32 1.0, %v1301_v36 }
 0xd20   :  { %1302 = vrcp.f32 %v823_v37 }
 0xd2d   :  { %v1303_v38 = vpop.eup %1302 }
 0xd8f   :  { %v843_v39 = vpop.permute.xlu1 %842 }
 0xd90   :  { %v845_v40 = vmul.f32 %v1303_v38, %v843_v39 }
 0xd92   :  { %1193 = vmatmul.mubr.msk.f32.vlgmr.msra.gmra.mxu0 %vm209_vm2, %v845_v40 }
 0xd93   :  { %1211 = vmatpush3.msra.mxu0 %v1065_v24  ;;  %1226 = vmatprep.mubr.msk.f32.mxu0 %vm1330_vm3, %v1328_v3 }
 0xd94   :  { %1212 = vmatprep.subr.mxu0 %v1328_v3 }
 0xd95   :  { %1213 = vmatpush3.msra.mxu0 %v1064_v28 }
 0xd96   :  { %1214 = vmatprep.subr.mxu0 %v1328_v3 }
 0xd97   :  { %1215 = vmatpush3.msra.mxu0 %v1063_v49 }
 0xd98   :  { %1216 = vmatprep.subr.mxu0 %v1328_v3 }
 0xd99   :  { %1217 = vmatpush3.msra.mxu0 %v1062_v50 }
 0xd9a   :  { %1218 = vmatprep.subr.mxu0 %v1328_v3 }
 0xd9b   :  { %1219 = vmatpush3.msra.mxu0 %v1061_v1 }
 0xd9c   :  { %1220 = vmatprep.subr.mxu0 %v1328_v3 }
 0xd9d   :  { %1221 = vmatpush3.msra.mxu0 %v1060_v2 }
 0xd9e   :  { %1222 = vmatprep.subr.mxu0 %v1328_v3 }
 0xd9f   :  { %1223 = vmatpush3.msra.mxu0 %v1059_v6 }
 0xda0   :  { %1224 = vmatprep.subr.mxu0 %v1328_v3  ;;  %v1199_v3 = vld [vmem:[%s1777_s5] ss:$0 sm:$0xff] }
 0xda1   :  { %1225 = vmatpush3.msra.mxu0 %v1058_v11 }
 0xe52   :  { %v915_v41 = vpop.f32.mrf.mxu0 }
 0xe53   :  { %v920_v42 = vadd.f32 %v915_v41, %v199_v0 }
 0xe54   :  { %v917_v52 = vpop.f32.mrf.mxu0 }
 0xe55   :  { %v921_v53 = vadd.f32 %v917_v52, %v201_v51  ;;  %v1194_v55 = vmul.f32 -1.442695, %v920_v42 }
 0xe57   :  { %1304 = vtanh.f32 %v921_v53  ;;  %v1195_v63 = vmul.f32 -1.442695, %v921_v53 }
 0xe58   :  { %1306 = vpow2.f32 %v1194_v55 }
 0xe64   :  { %v1305_v54 = vpop.eup %1304 }
 0xe65   :  { %937 = vrot.lane.b32.xlu0 %v1305_v54, %s1329_s21  ;;  %v1307_v56 = vpop.eup %1306 }
 0xe66   :  { %v928_v57 = vadd.f32 1.0, %v1307_v56 }
 0xe68   :  { %1308 = vrcp.f32 %v928_v57 }
 0xe75   :  { %v1309_v58 = vpop.eup %1308 }
 0xe76   :  { %v935_v47 = vmul.f32 %v1309_v58, %v839_v45 }
 0xed7   :  { %v938_v59 = vpop.permute.xlu0 %937 }
 0xed8   :  { %v940_v60 = vmul.f32 %v1309_v58, %v938_v59 }
 0xeda   :  { %942 = vrot.lane.b32.xlu1 %v940_v60, %s1329_s21 }
 0xf4c   :  { %v943_v61 = vpop.permute.xlu1 %942 }
 0xf4d   :  { %v945_v48 = vadd.f32 %v943_v61, %v935_v47 }
 0xf4f   :  { %1310 = vtanh.f32 %v945_v48 }
 0xf50   :  { %1312 = vpow2.f32 %v1195_v63 }
 0xf5c   :  { %v1311_v62 = vpop.eup %1310 }
 0xf5d   :  { %948 = vrot.lane.b32.xlu0 %v1311_v62, %s1329_s21  ;;  %v1313_v7 = vpop.eup %1312 }
 0xf5e   :  { %v929_v9 = vadd.f32 1.0, %v1313_v7 }
 0xf60   :  { %1314 = vrcp.f32 %v929_v9 }
 0xf6d   :  { %v1315_v10 = vpop.eup %1314 }
 0xfcf   :  { %v949_v20 = vpop.permute.xlu0 %948 }
 0xfd0   :  { %v951_v21 = vmul.f32 %v1315_v10, %v949_v20 }
 0xfd2   :  { %1196 = vmatmul.mubr.msk.f32.vlgmr.msra.gmra.mxu1 %vm209_vm2, %v951_v21 }
0x1092   :  { %v1021_v23 = vpop.f32.mrf.mxu1 }
0x1093   :  { %v1026_v43 = vadd.f32 %v1021_v23, %v205_v22 }
0x1094   :  { %v1023_v26 = vpop.f32.mrf.mxu1 }
0x1095   :  { %v1027_v44 = vadd.f32 %v1023_v26, %v207_v25  ;;  %v1197_v29 = vmul.f32 -1.442695, %v1026_v43 }
0x1097   :  { %1316 = vtanh.f32 %v1027_v44  ;;  %v1198_v13 = vmul.f32 -1.442695, %v1027_v44 }
0x1098   :  { %1318 = vpow2.f32 %v1197_v29 }
0x10a4   :  { %v1317_v27 = vpop.eup %1316 }
0x10a5   :  { %1043 = vrot.lane.b32.xlu1 %v1317_v27, %s1329_s21  ;;  %v1319_v30 = vpop.eup %1318 }
0x10a6   :  { %v1034_v31 = vadd.f32 1.0, %v1319_v30 }
0x10a8   :  { %1320 = vrcp.f32 %v1034_v31 }
0x10b5   :  { %v1321_v32 = vpop.eup %1320 }
0x10b6   :  { %v1041_v4 = vmul.f32 %v1321_v32, %v945_v48 }
0x1117   :  { %v1044_v33 = vpop.permute.xlu1 %1043 }
0x1118   :  { %v1046_v34 = vmul.f32 %v1321_v32, %v1044_v33 }
0x111a   :  { %1048 = vrot.lane.b32.xlu0 %v1046_v34, %s1329_s21 }
0x118c   :  { %v1049_v5 = vpop.permute.xlu0 %1048 }
0x118d   :  { %v1051_v8 = vadd.f32 %v1049_v5, %v1041_v4 }
0x118f   :  { %1322 = vtanh.f32 %v1051_v8  ;;  %1150 = vrot.lane.b32.xlu0 %v1051_v8, %s1329_s21 }
0x1190   :  { %1324 = vpow2.f32 %v1198_v13 }
0x119c   :  { %v1323_v12 = vpop.eup %1322 }
0x119d   :  { %1054 = vrot.lane.b32.xlu1 %v1323_v12, %s1329_s21  ;;  %v1325_v14 = vpop.eup %1324 }
0x119e   :  { %v1035_v15 = vadd.f32 1.0, %v1325_v14 }
0x11a0   :  { %1326 = vrcp.f32 %v1035_v15 }
0x11ad   :  { %v1327_v17 = vpop.eup %1326 }
0x1201   :  { %v1151_v16 = vpop.permute.xlu0 %1150 }
0x1202   :  { %1153 = vst.msk [vmem:[%s1775_s8] sm:$0xff] %vm209_vm2, %v1151_v16 }
0x120f   :  { %v1055_v18 = vpop.permute.xlu1 %1054 }
0x1210   :  { %v1057_v19 = vmul.f32 %v1327_v17, %v1055_v18 }
0x1212   :  { %1148 = vst.msk [vmem:[%s1776_s7] sm:$0xff] %vm209_vm2, %v1057_v19  ;;  %1227 = vmatmul.mubr.msk.f32.vlgmr.msra.gmra.mxu0 %vm209_vm2, %v1057_v19 }
0x12d2   :  { %v1142_v45 = vpop.f32.mrf.mxu0 }
0x12d3   :  { %v1143_v46 = vadd.f32 %v1199_v3, %v1142_v45 }
0x12d4   :  { %v1228_v35 = vpop.f32.mrf.mxu0 }
0x12d5   :  { %1147 = vst.msk [vmem:[%s1778_s6] sm:$0xff] %vm1146_vm4, %v1143_v46 }

</bundles_post_ra>
